<compile_context>
chip_gen: v6e
topology: v6e:2x2x1
jax: 0.10.0
libtpu: 0.0.40
codegen_flags: <defaults>
</compile_context>

<pallas_src>
import functools

import jax
import jax.numpy as jnp
from jax.experimental import pallas as pl
from jax.experimental.pallas import tpu as pltpu


def lstm_lm_kernel(x_ref, w_ref, b_ref, embT_ref, bout_ref, out_ref,
                   h_ref, c_ref, hs_ref):
    """One grid step = (LSTM chunk recurrence, run only at vtile==0) + one tied
    projection matmul for one vocab tile.

    x_ref    : (Tc, BP, H)  bf16  embedded inputs for this time chunk (time-major)
    w_ref    : (2H, 4H)     bf16  packed [W_ih^T ; W_hh^T], gate order i, f, g, o
    b_ref    : (1, 4H)      f32   combined bias b_ih + b_hh
    embT_ref : (H, Vt)      bf16  tied embedding (transposed), current vocab tile
    bout_ref : (1, Vt)      f32   output-layer bias, current vocab tile
    out_ref  : (Tc*BP, Vt)  f32   logits block, rows = (t, b) flattened time-major
    h_ref, c_ref : (BP, H)  f32   recurrent state (persists across grid steps)
    hs_ref   : (Tc*BP, H)   f32   hidden states of the current chunk
    """
    c_idx = pl.program_id(0)   # time-chunk index (outer, sequential recurrence)
    v_idx = pl.program_id(1)   # vocab-tile index (inner)

    Tc, BP, H = x_ref.shape

    # ---- LSTM recurrence: run once per time chunk (first vocab tile only). ----
    @pl.when(v_idx == 0)
    def _recurrence():
        @pl.when(c_idx == 0)
        def _init():
            h_ref[...] = jnp.zeros_like(h_ref)
            c_ref[...] = jnp.zeros_like(c_ref)

        w = w_ref[...]            # (2H, 4H) bf16, loaded once per chunk
        b = b_ref[...]            # (1, 4H)  f32

        def step(t, carry):
            h, c = carry                                        # f32 state
            x_t = x_ref[t]                                      # (BP, H) bf16
            xh = jnp.concatenate([x_t, h.astype(jnp.bfloat16)], axis=-1)  # (BP, 2H)
            # Single fused gate matmul: [BP, 2H] @ [2H, 4H], f32 accumulation.
            gates = jnp.dot(xh, w, preferred_element_type=jnp.float32) + b
            i = jax.nn.sigmoid(gates[:, 0 * H:1 * H])
            f = jax.nn.sigmoid(gates[:, 1 * H:2 * H])
            g = jnp.tanh(gates[:, 2 * H:3 * H])
            o = jax.nn.sigmoid(gates[:, 3 * H:4 * H])
            c_new = f * c + i * g
            h_new = o * jnp.tanh(c_new)
            row0 = pl.multiple_of(t * BP, BP)                   # sublane-aligned (BP%8==0)
            hs_ref[pl.ds(row0, BP), :] = h_new
            return (h_new, c_new)

        h_fin, c_fin = jax.lax.fori_loop(
            0, Tc, step, (h_ref[...], c_ref[...]), unroll=True)
        h_ref[...] = h_fin
        c_ref[...] = c_fin

    # ---- Tied-weight output projection: one [Tc*BP, H] @ [H, Vt] bf16 matmul. ----
    hs = hs_ref[...].astype(jnp.bfloat16)
    out_ref[...] = (jnp.dot(hs, embT_ref[...], preferred_element_type=jnp.float32)
                    + bout_ref[...])


def lm_lstm_forward(tokens, params, *, time_chunk=4, vocab_tile=128):
    """Forward pass of LM_LSTM (eval mode). tokens: int32 [B, T] -> f32 [B, V, T]."""
    emb_w = params["emb_w"]      # (V, H) f32   tied embedding / output weight
    w_pk = params["w_packed"]    # (2H, 4H) bf16
    b = params["b"]              # (1, 4H) f32
    embT = params["embT"]        # (H, V)  bf16 (precomputed transpose)
    b_out = params["b_out"]      # (1, V)  f32

    B, T = tokens.shape
    V, H = emb_w.shape
    Tc, Vt = time_chunk, vocab_tile
    assert T % Tc == 0, (T, Tc)
    assert V % Vt == 0, (V, Vt)

    # Pad batch to a multiple of 8 sublanes so all compute/store tiles are dense.
    BP = ((B + 7) // 8) * 8
    tokens_p = jnp.pad(tokens, ((0, BP - B), (0, 0)))           # padded rows: token 0

    # Embedding gather is XLA glue; VarDropout layers are identity in eval mode.
    emb = jnp.take(emb_w, tokens_p, axis=0)                     # (BP, T, H) f32
    x_tm = jnp.transpose(emb, (1, 0, 2)).astype(jnp.bfloat16)   # (T, BP, H) time-major

    grid_spec = pltpu.PrefetchScalarGridSpec(
        num_scalar_prefetch=0,
        grid=(T // Tc, V // Vt),          # vocab tile is the innermost axis
        in_specs=[
            pl.BlockSpec((Tc, BP, H), lambda c, v: (c, 0, 0)),   # x chunk
            pl.BlockSpec((2 * H, 4 * H), lambda c, v: (0, 0)),   # packed gate weights
            pl.BlockSpec((1, 4 * H), lambda c, v: (0, 0)),       # combined gate bias
            pl.BlockSpec((H, Vt), lambda c, v: (0, v)),          # tied embedding^T tile
            pl.BlockSpec((1, Vt), lambda c, v: (0, v)),          # output bias tile
        ],
        out_specs=pl.BlockSpec((Tc * BP, Vt), lambda c, v: (c, v)),
        scratch_shapes=[
            pltpu.VMEM((BP, H), jnp.float32),        # h state
            pltpu.VMEM((BP, H), jnp.float32),        # c state
            pltpu.VMEM((Tc * BP, H), jnp.float32),   # hidden states of current chunk
        ],
    )

    logits_flat = pl.pallas_call(
        lstm_lm_kernel,
        out_shape=jax.ShapeDtypeStruct((T * BP, V), jnp.float32),
        grid_spec=grid_spec,
        compiler_params=pltpu.CompilerParams(
            # Recurrence -> sequential time axis; vocab tiles reuse the chunk's hidden
            # states computed at v == 0, so that axis is sequential too.
            dimension_semantics=("arbitrary", "arbitrary"),
            vmem_limit_bytes=32 * 1024 * 1024,
        ),
    )(x_tm, w_pk, b, embT, b_out)

    # (T*BP, V) -> (T, BP, V) is a free (row-major) reshape; drop the batch padding;
    # then the module-mandated .permute(0, 2, 1) -> (B, V, T).
    logits = logits_flat.reshape(T, BP, V)[:, :B, :]
    return jnp.transpose(logits, (1, 2, 0))


def init_params(key, vocab_size, hidden_size, pad_index=0):
    """Deterministic synthetic parameters mirroring the PyTorch module shapes."""
    H, V = hidden_size, vocab_size
    k_emb, k_wih, k_whh, k_bih, k_bhh, k_bout = jax.random.split(key, 6)

    emb_w = jax.random.normal(k_emb, (V, H), jnp.float32)
    emb_w = emb_w.at[pad_index].set(0.0)            # padding_idx row zeroed

    bound = 1.0 / float(hidden_size) ** 0.5
    w_ih = jax.random.uniform(k_wih, (4 * H, H), jnp.float32, -bound, bound)
    w_hh = jax.random.uniform(k_whh, (4 * H, H), jnp.float32, -bound, bound)
    b_ih = jax.random.uniform(k_bih, (4 * H,), jnp.float32, -bound, bound)
    b_hh = jax.random.uniform(k_bhh, (4 * H,), jnp.float32, -bound, bound)
    b_out = jax.random.uniform(k_bout, (V,), jnp.float32, -bound, bound)

    # Raw PyTorch-layout tensors (for the pure-JAX reference) ...
    raw = dict(emb_w=emb_w, w_ih=w_ih, w_hh=w_hh, b_ih=b_ih, b_hh=b_hh, b_out=b_out)

    # ... and kernel-layout tensors: packed & pre-transposed once, bf16 weights.
    w_packed = jnp.concatenate([w_ih.T, w_hh.T], axis=0)        # (2H, 4H), gates i,f,g,o
    params = dict(
        emb_w=emb_w,
        w_packed=w_packed.astype(jnp.bfloat16),
        b=(b_ih + b_hh).reshape(1, 4 * H),
        embT=jnp.transpose(emb_w).astype(jnp.bfloat16),
        b_out=b_out.reshape(1, V),
    )
    return params, raw


def reference_forward(tokens, raw):
    """Pure-JAX f32 reference matching PyTorch LSTM semantics (gate order i,f,g,o)."""
    emb_w, w_ih, w_hh = raw["emb_w"], raw["w_ih"], raw["w_hh"]
    b_ih, b_hh, b_out = raw["b_ih"], raw["b_hh"], raw["b_out"]
    emb = jnp.take(emb_w, tokens, axis=0)           # (B, T, H)
    B, T, H = emb.shape

    def step(carry, x_t):
        h, c = carry
        gates = x_t @ w_ih.T + b_ih + h @ w_hh.T + b_hh
        i, f, g, o = jnp.split(gates, 4, axis=-1)
        i, f, o = jax.nn.sigmoid(i), jax.nn.sigmoid(f), jax.nn.sigmoid(o)
        g = jnp.tanh(g)
        c = f * c + i * g
        h = o * jnp.tanh(c)
        return (h, c), h

    h0 = jnp.zeros((B, H), jnp.float32)
    c0 = jnp.zeros((B, H), jnp.float32)
    _, hs = jax.lax.scan(step, (h0, c0), jnp.transpose(emb, (1, 0, 2)))
    lstm_out = jnp.transpose(hs, (1, 0, 2))         # (B, T, H)
    logits = lstm_out @ emb_w.T + b_out             # (B, T, V)
    return jnp.transpose(logits, (0, 2, 1))         # (B, V, T)


if __name__ == "__main__":
    B, T = 2, 8
    H = 32          # emb_size == hidden_size (weight-tying requirement)
    V = 128         # output_size (vocab)

    key = jax.random.PRNGKey(0)
    k_params, k_tok = jax.random.split(key)
    params, raw = init_params(k_params, V, H, pad_index=0)
    tokens = jax.random.randint(k_tok, (B, T), 0, V, dtype=jnp.int32)

    fwd = jax.jit(functools.partial(lm_lstm_forward, time_chunk=4, vocab_tile=128))
    out = fwd(tokens, params)
    out = jax.block_until_ready(out)
    assert out.shape == (B, V, T), out.shape

    # Reference is pure f32; kernel uses bf16 weights/operands (f32 accumulation), so
    # allow a bf16-quantization-sized, scale-aware tolerance.
    ref = reference_forward(tokens, raw)
    max_err = float(jnp.max(jnp.abs(out - ref)))
    tol = 5e-2 * float(jnp.max(jnp.abs(ref))) + 5e-2
    assert max_err <= tol, ("mismatch vs pure-JAX reference", max_err, tol)

    print("KERNEL_OK")
</pallas_src>

<mosaic_0001>
module attributes {stable_mosaic.version = 11 : i64} {
  func.func @lstm_lm_kernel(%arg0: i32, %arg1: i32, %arg2: memref<4x8x32xbf16, #tpu.memory_space<vmem>>, %arg3: memref<64x128xbf16, #tpu.memory_space<vmem>>, %arg4: memref<1x128xf32, #tpu.memory_space<vmem>>, %arg5: memref<32x128xbf16, #tpu.memory_space<vmem>>, %arg6: memref<1x128xf32, #tpu.memory_space<vmem>>, %arg7: memref<32x128xf32, #tpu.memory_space<vmem>>, %arg8: memref<8x32xf32, #tpu.memory_space<vmem>>, %arg9: memref<8x32xf32, #tpu.memory_space<vmem>>, %arg10: memref<32x32xf32, #tpu.memory_space<vmem>>) attributes {dimension_semantics = [#tpu.dimension_semantics<arbitrary>, #tpu.dimension_semantics<arbitrary>], iteration_bounds = array<i64: 2, 1>, scalar_prefetch = 0 : i64, scratch_operands = 3 : i64, tpu.core_type = #tpu.core_type<tc>, window_params = [{transform_indices = @transform_0, window_bounds = array<i64: 4, 8, 32>}, {pipeline_mode = #tpu.pipeline_mode<synchronous>, transform_indices = @transform_1, window_bounds = array<i64: 64, 128>}, {pipeline_mode = #tpu.pipeline_mode<synchronous>, transform_indices = @transform_2, window_bounds = array<i64: 1, 128>}, {transform_indices = @transform_3, window_bounds = array<i64: 32, 128>}, {transform_indices = @transform_4, window_bounds = array<i64: 1, 128>}, {transform_indices = @transform_5, window_bounds = array<i64: 32, 128>}]} {
    %c0_i32 = arith.constant 0 : i32
    %0 = arith.cmpi eq, %arg1, %c0_i32 : i32
    %1 = arith.extui %0 : i1 to i32
    %c0_i32_0 = arith.constant 0 : i32
    %2 = arith.cmpi ne, %1, %c0_i32_0 : i32
    scf.if %2 {
      %c0_i32_8 = arith.constant 0 : i32
      %11 = arith.cmpi eq, %arg0, %c0_i32_8 : i32
      %12 = arith.extui %11 : i1 to i32
      %c0_i32_9 = arith.constant 0 : i32
      %13 = arith.cmpi ne, %12, %c0_i32_9 : i32
      scf.if %13 {
        %cst_54 = arith.constant 0.000000e+00 : f32
        %168 = vector.broadcast %cst_54 : f32 to vector<8x32xf32>
        %c0_55 = arith.constant 0 : index
        %c0_56 = arith.constant 0 : index
        %169 = vector.load %arg8[%c0_55, %c0_56] : memref<8x32xf32, #tpu.memory_space<vmem>>, vector<8x32xf32>
        tpu.vector_store %arg8[%c0_55, %c0_56], %168 {strides = array<i32>} : memref<8x32xf32, #tpu.memory_space<vmem>>, vector<8x32xf32>,
        %cst_57 = arith.constant 0.000000e+00 : f32
        %170 = vector.broadcast %cst_57 : f32 to vector<8x32xf32>
        %c0_58 = arith.constant 0 : index
        %c0_59 = arith.constant 0 : index
        %171 = vector.load %arg9[%c0_58, %c0_59] : memref<8x32xf32, #tpu.memory_space<vmem>>, vector<8x32xf32>
        tpu.vector_store %arg9[%c0_58, %c0_59], %170 {strides = array<i32>} : memref<8x32xf32, #tpu.memory_space<vmem>>, vector<8x32xf32>,
      } else {
      }
      %c0_10 = arith.constant 0 : index
      %c0_11 = arith.constant 0 : index
      %14 = vector.load %arg3[%c0_10, %c0_11] : memref<64x128xbf16, #tpu.memory_space<vmem>>, vector<64x128xbf16>
      %c0_12 = arith.constant 0 : index
      %c0_13 = arith.constant 0 : index
      %15 = vector.load %arg4[%c0_12, %c0_13] : memref<1x128xf32, #tpu.memory_space<vmem>>, vector<1x128xf32>
      %c0_14 = arith.constant 0 : index
      %c0_15 = arith.constant 0 : index
      %16 = vector.load %arg8[%c0_14, %c0_15] : memref<8x32xf32, #tpu.memory_space<vmem>>, vector<8x32xf32>
      %c0_16 = arith.constant 0 : index
      %c0_17 = arith.constant 0 : index
      %17 = vector.load %arg9[%c0_16, %c0_17] : memref<8x32xf32, #tpu.memory_space<vmem>>, vector<8x32xf32>
      %c0_i32_18 = arith.constant 0 : i32
      %18 = arith.index_cast %c0_i32_18 : i32 to index
      %c0_19 = arith.constant 0 : index
      %c0_20 = arith.constant 0 : index
      %19 = vector.load %arg2[%18, %c0_19, %c0_20] : memref<4x8x32xbf16, #tpu.memory_space<vmem>>, vector<1x8x32xbf16>
      %20 = vector.shape_cast %19 : vector<1x8x32xbf16> to vector<8x32xbf16>
      %21 = arith.truncf %16 : vector<8x32xf32> to vector<8x32xbf16>
      %22 = tpu.concatenate %20, %21 in 1 : vector<8x32xbf16>, vector<8x32xbf16> -> vector<8x64xbf16>
      %cst_21 = arith.constant dense<0.000000e+00> : vector<8x128xf32>
      %23 = tpu.matmul %22, %14, %cst_21 {dimension_numbers = #tpu.dot_dimension_numbers<[1], [0], [0], [1], [0, 0, 1, 1], [], []>} : vector<8x64xbf16>, vector<64x128xbf16>, vector<8x128xf32> -> vector<8x128xf32>
      %24 = vector.broadcast %15 : vector<1x128xf32> to vector<8x128xf32>
      %25 = arith.addf %23, %24 : vector<8x128xf32>
      %26 = vector.extract_strided_slice %25 {offsets = [0, 0], sizes = [8, 32], strides = [1, 1]} : vector<8x128xf32> to vector<8x32xf32>
      %27 = arith.negf %26 : vector<8x32xf32>
      %28 = math.exp %27 : vector<8x32xf32>
      %cst_22 = arith.constant 1.000000e+00 : f32
      %29 = vector.broadcast %cst_22 : f32 to vector<8x32xf32>
      %30 = arith.addf %29, %28 : vector<8x32xf32>
      %31 = arith.divf %29, %30 : vector<8x32xf32>
      %32 = vector.extract_strided_slice %25 {offsets = [0, 32], sizes = [8, 32], strides = [1, 1]} : vector<8x128xf32> to vector<8x32xf32>
      %33 = arith.negf %32 : vector<8x32xf32>
      %34 = math.exp %33 : vector<8x32xf32>
      %cst_23 = arith.constant 1.000000e+00 : f32
      %35 = vector.broadcast %cst_23 : f32 to vector<8x32xf32>
      %36 = arith.addf %35, %34 : vector<8x32xf32>
      %37 = arith.divf %35, %36 : vector<8x32xf32>
      %38 = vector.extract_strided_slice %25 {offsets = [0, 64], sizes = [8, 32], strides = [1, 1]} : vector<8x128xf32> to vector<8x32xf32>
      %39 = math.tanh %38 : vector<8x32xf32>
      %40 = vector.extract_strided_slice %25 {offsets = [0, 96], sizes = [8, 32], strides = [1, 1]} : vector<8x128xf32> to vector<8x32xf32>
      %41 = arith.negf %40 : vector<8x32xf32>
      %42 = math.exp %41 : vector<8x32xf32>
      %cst_24 = arith.constant 1.000000e+00 : f32
      %43 = vector.broadcast %cst_24 : f32 to vector<8x32xf32>
      %44 = arith.addf %43, %42 : vector<8x32xf32>
      %45 = arith.divf %43, %44 : vector<8x32xf32>
      %46 = arith.mulf %37, %17 : vector<8x32xf32>
      %47 = arith.mulf %31, %39 : vector<8x32xf32>
      %48 = arith.addf %46, %47 : vector<8x32xf32>
      %49 = math.tanh %48 : vector<8x32xf32>
      %50 = arith.mulf %45, %49 : vector<8x32xf32>
      %c8_i32 = arith.constant 8 : i32
      %51 = arith.muli %c0_i32_18, %c8_i32 : i32
      %52 = tpu.assume_multiple %51, 8 : i32
      %53 = arith.index_cast %52 : i32 to index
      %c0_25 = arith.constant 0 : index
      %54 = vector.load %arg10[%53, %c0_25] : memref<32x32xf32, #tpu.memory_space<vmem>>, vector<8x32xf32>
      tpu.vector_store %arg10[%53, %c0_25], %50 {strides = array<i32>} : memref<32x32xf32, #tpu.memory_space<vmem>>, vector<8x32xf32>,
      %c1_i32 = arith.constant 1 : i32
      %55 = arith.index_cast %c1_i32 : i32 to index
      %c0_26 = arith.constant 0 : index
      %c0_27 = arith.constant 0 : index
      %56 = vector.load %arg2[%55, %c0_26, %c0_27] : memref<4x8x32xbf16, #tpu.memory_space<vmem>>, vector<1x8x32xbf16>
      %57 = vector.shape_cast %56 : vector<1x8x32xbf16> to vector<8x32xbf16>
      %58 = arith.truncf %50 : vector<8x32xf32> to vector<8x32xbf16>
      %59 = tpu.concatenate %57, %58 in 1 : vector<8x32xbf16>, vector<8x32xbf16> -> vector<8x64xbf16>
      %cst_28 = arith.constant dense<0.000000e+00> : vector<8x128xf32>
      %60 = tpu.matmul %59, %14, %cst_28 {dimension_numbers = #tpu.dot_dimension_numbers<[1], [0], [0], [1], [0, 0, 1, 1], [], []>} : vector<8x64xbf16>, vector<64x128xbf16>, vector<8x128xf32> -> vector<8x128xf32>
      %61 = vector.broadcast %15 : vector<1x128xf32> to vector<8x128xf32>
      %62 = arith.addf %60, %61 : vector<8x128xf32>
      %63 = vector.extract_strided_slice %62 {offsets = [0, 0], sizes = [8, 32], strides = [1, 1]} : vector<8x128xf32> to vector<8x32xf32>
      %64 = arith.negf %63 : vector<8x32xf32>
      %65 = math.exp %64 : vector<8x32xf32>
      %cst_29 = arith.constant 1.000000e+00 : f32
      %66 = vector.broadcast %cst_29 : f32 to vector<8x32xf32>
      %67 = arith.addf %66, %65 : vector<8x32xf32>
      %68 = arith.divf %66, %67 : vector<8x32xf32>
      %69 = vector.extract_strided_slice %62 {offsets = [0, 32], sizes = [8, 32], strides = [1, 1]} : vector<8x128xf32> to vector<8x32xf32>
      %70 = arith.negf %69 : vector<8x32xf32>
      %71 = math.exp %70 : vector<8x32xf32>
      %cst_30 = arith.constant 1.000000e+00 : f32
      %72 = vector.broadcast %cst_30 : f32 to vector<8x32xf32>
      %73 = arith.addf %72, %71 : vector<8x32xf32>
      %74 = arith.divf %72, %73 : vector<8x32xf32>
      %75 = vector.extract_strided_slice %62 {offsets = [0, 64], sizes = [8, 32], strides = [1, 1]} : vector<8x128xf32> to vector<8x32xf32>
      %76 = math.tanh %75 : vector<8x32xf32>
      %77 = vector.extract_strided_slice %62 {offsets = [0, 96], sizes = [8, 32], strides = [1, 1]} : vector<8x128xf32> to vector<8x32xf32>
      %78 = arith.negf %77 : vector<8x32xf32>
      %79 = math.exp %78 : vector<8x32xf32>
      %cst_31 = arith.constant 1.000000e+00 : f32
      %80 = vector.broadcast %cst_31 : f32 to vector<8x32xf32>
      %81 = arith.addf %80, %79 : vector<8x32xf32>
      %82 = arith.divf %80, %81 : vector<8x32xf32>
      %83 = arith.mulf %74, %48 : vector<8x32xf32>
      %84 = arith.mulf %68, %76 : vector<8x32xf32>
      %85 = arith.addf %83, %84 : vector<8x32xf32>
      %86 = math.tanh %85 : vector<8x32xf32>
      %87 = arith.mulf %82, %86 : vector<8x32xf32>
      %c8_i32_32 = arith.constant 8 : i32
      %88 = arith.muli %c1_i32, %c8_i32_32 : i32
      %89 = tpu.assume_multiple %88, 8 : i32
      %90 = arith.index_cast %89 : i32 to index
      %c0_33 = arith.constant 0 : index
      %91 = vector.load %arg10[%90, %c0_33] : memref<32x32xf32, #tpu.memory_space<vmem>>, vector<8x32xf32>
      tpu.vector_store %arg10[%90, %c0_33], %87 {strides = array<i32>} : memref<32x32xf32, #tpu.memory_space<vmem>>, vector<8x32xf32>,
      %c2_i32 = arith.constant 2 : i32
      %92 = arith.index_cast %c2_i32 : i32 to index
      %c0_34 = arith.constant 0 : index
      %c0_35 = arith.constant 0 : index
      %93 = vector.load %arg2[%92, %c0_34, %c0_35] : memref<4x8x32xbf16, #tpu.memory_space<vmem>>, vector<1x8x32xbf16>
      %94 = vector.shape_cast %93 : vector<1x8x32xbf16> to vector<8x32xbf16>
      %95 = arith.truncf %87 : vector<8x32xf32> to vector<8x32xbf16>
      %96 = tpu.concatenate %94, %95 in 1 : vector<8x32xbf16>, vector<8x32xbf16> -> vector<8x64xbf16>
      %cst_36 = arith.constant dense<0.000000e+00> : vector<8x128xf32>
      %97 = tpu.matmul %96, %14, %cst_36 {dimension_numbers = #tpu.dot_dimension_numbers<[1], [0], [0], [1], [0, 0, 1, 1], [], []>} : vector<8x64xbf16>, vector<64x128xbf16>, vector<8x128xf32> -> vector<8x128xf32>
      %98 = vector.broadcast %15 : vector<1x128xf32> to vector<8x128xf32>
      %99 = arith.addf %97, %98 : vector<8x128xf32>
      %100 = vector.extract_strided_slice %99 {offsets = [0, 0], sizes = [8, 32], strides = [1, 1]} : vector<8x128xf32> to vector<8x32xf32>
      %101 = arith.negf %100 : vector<8x32xf32>
      %102 = math.exp %101 : vector<8x32xf32>
      %cst_37 = arith.constant 1.000000e+00 : f32
      %103 = vector.broadcast %cst_37 : f32 to vector<8x32xf32>
      %104 = arith.addf %103, %102 : vector<8x32xf32>
      %105 = arith.divf %103, %104 : vector<8x32xf32>
      %106 = vector.extract_strided_slice %99 {offsets = [0, 32], sizes = [8, 32], strides = [1, 1]} : vector<8x128xf32> to vector<8x32xf32>
      %107 = arith.negf %106 : vector<8x32xf32>
      %108 = math.exp %107 : vector<8x32xf32>
      %cst_38 = arith.constant 1.000000e+00 : f32
      %109 = vector.broadcast %cst_38 : f32 to vector<8x32xf32>
      %110 = arith.addf %109, %108 : vector<8x32xf32>
      %111 = arith.divf %109, %110 : vector<8x32xf32>
      %112 = vector.extract_strided_slice %99 {offsets = [0, 64], sizes = [8, 32], strides = [1, 1]} : vector<8x128xf32> to vector<8x32xf32>
      %113 = math.tanh %112 : vector<8x32xf32>
      %114 = vector.extract_strided_slice %99 {offsets = [0, 96], sizes = [8, 32], strides = [1, 1]} : vector<8x128xf32> to vector<8x32xf32>
      %115 = arith.negf %114 : vector<8x32xf32>
      %116 = math.exp %115 : vector<8x32xf32>
      %cst_39 = arith.constant 1.000000e+00 : f32
      %117 = vector.broadcast %cst_39 : f32 to vector<8x32xf32>
      %118 = arith.addf %117, %116 : vector<8x32xf32>
      %119 = arith.divf %117, %118 : vector<8x32xf32>
      %120 = arith.mulf %111, %85 : vector<8x32xf32>
      %121 = arith.mulf %105, %113 : vector<8x32xf32>
      %122 = arith.addf %120, %121 : vector<8x32xf32>
      %123 = math.tanh %122 : vector<8x32xf32>
      %124 = arith.mulf %119, %123 : vector<8x32xf32>
      %c8_i32_40 = arith.constant 8 : i32
      %125 = arith.muli %c2_i32, %c8_i32_40 : i32
      %126 = tpu.assume_multiple %125, 8 : i32
      %127 = arith.index_cast %126 : i32 to index
      %c0_41 = arith.constant 0 : index
      %128 = vector.load %arg10[%127, %c0_41] : memref<32x32xf32, #tpu.memory_space<vmem>>, vector<8x32xf32>
      tpu.vector_store %arg10[%127, %c0_41], %124 {strides = array<i32>} : memref<32x32xf32, #tpu.memory_space<vmem>>, vector<8x32xf32>,
      %c3_i32 = arith.constant 3 : i32
      %129 = arith.index_cast %c3_i32 : i32 to index
      %c0_42 = arith.constant 0 : index
      %c0_43 = arith.constant 0 : index
      %130 = vector.load %arg2[%129, %c0_42, %c0_43] : memref<4x8x32xbf16, #tpu.memory_space<vmem>>, vector<1x8x32xbf16>
      %131 = vector.shape_cast %130 : vector<1x8x32xbf16> to vector<8x32xbf16>
      %132 = arith.truncf %124 : vector<8x32xf32> to vector<8x32xbf16>
      %133 = tpu.concatenate %131, %132 in 1 : vector<8x32xbf16>, vector<8x32xbf16> -> vector<8x64xbf16>
      %cst_44 = arith.constant dense<0.000000e+00> : vector<8x128xf32>
      %134 = tpu.matmul %133, %14, %cst_44 {dimension_numbers = #tpu.dot_dimension_numbers<[1], [0], [0], [1], [0, 0, 1, 1], [], []>} : vector<8x64xbf16>, vector<64x128xbf16>, vector<8x128xf32> -> vector<8x128xf32>
      %135 = vector.broadcast %15 : vector<1x128xf32> to vector<8x128xf32>
      %136 = arith.addf %134, %135 : vector<8x128xf32>
      %137 = vector.extract_strided_slice %136 {offsets = [0, 0], sizes = [8, 32], strides = [1, 1]} : vector<8x128xf32> to vector<8x32xf32>
      %138 = arith.negf %137 : vector<8x32xf32>
      %139 = math.exp %138 : vector<8x32xf32>
      %cst_45 = arith.constant 1.000000e+00 : f32
      %140 = vector.broadcast %cst_45 : f32 to vector<8x32xf32>
      %141 = arith.addf %140, %139 : vector<8x32xf32>
      %142 = arith.divf %140, %141 : vector<8x32xf32>
      %143 = vector.extract_strided_slice %136 {offsets = [0, 32], sizes = [8, 32], strides = [1, 1]} : vector<8x128xf32> to vector<8x32xf32>
      %144 = arith.negf %143 : vector<8x32xf32>
      %145 = math.exp %144 : vector<8x32xf32>
      %cst_46 = arith.constant 1.000000e+00 : f32
      %146 = vector.broadcast %cst_46 : f32 to vector<8x32xf32>
      %147 = arith.addf %146, %145 : vector<8x32xf32>
      %148 = arith.divf %146, %147 : vector<8x32xf32>
      %149 = vector.extract_strided_slice %136 {offsets = [0, 64], sizes = [8, 32], strides = [1, 1]} : vector<8x128xf32> to vector<8x32xf32>
      %150 = math.tanh %149 : vector<8x32xf32>
      %151 = vector.extract_strided_slice %136 {offsets = [0, 96], sizes = [8, 32], strides = [1, 1]} : vector<8x128xf32> to vector<8x32xf32>
      %152 = arith.negf %151 : vector<8x32xf32>
      %153 = math.exp %152 : vector<8x32xf32>
      %cst_47 = arith.constant 1.000000e+00 : f32
      %154 = vector.broadcast %cst_47 : f32 to vector<8x32xf32>
      %155 = arith.addf %154, %153 : vector<8x32xf32>
      %156 = arith.divf %154, %155 : vector<8x32xf32>
      %157 = arith.mulf %148, %122 : vector<8x32xf32>
      %158 = arith.mulf %142, %150 : vector<8x32xf32>
      %159 = arith.addf %157, %158 : vector<8x32xf32>
      %160 = math.tanh %159 : vector<8x32xf32>
      %161 = arith.mulf %156, %160 : vector<8x32xf32>
      %c8_i32_48 = arith.constant 8 : i32
      %162 = arith.muli %c3_i32, %c8_i32_48 : i32
      %163 = tpu.assume_multiple %162, 8 : i32
      %164 = arith.index_cast %163 : i32 to index
      %c0_49 = arith.constant 0 : index
      %165 = vector.load %arg10[%164, %c0_49] : memref<32x32xf32, #tpu.memory_space<vmem>>, vector<8x32xf32>
      tpu.vector_store %arg10[%164, %c0_49], %161 {strides = array<i32>} : memref<32x32xf32, #tpu.memory_space<vmem>>, vector<8x32xf32>,
      %c4_i32 = arith.constant 4 : i32
      %c0_50 = arith.constant 0 : index
      %c0_51 = arith.constant 0 : index
      %166 = vector.load %arg8[%c0_50, %c0_51] : memref<8x32xf32, #tpu.memory_space<vmem>>, vector<8x32xf32>
      tpu.vector_store %arg8[%c0_50, %c0_51], %161 {strides = array<i32>} : memref<8x32xf32, #tpu.memory_space<vmem>>, vector<8x32xf32>,
      %c0_52 = arith.constant 0 : index
      %c0_53 = arith.constant 0 : index
      %167 = vector.load %arg9[%c0_52, %c0_53] : memref<8x32xf32, #tpu.memory_space<vmem>>, vector<8x32xf32>
      tpu.vector_store %arg9[%c0_52, %c0_53], %159 {strides = array<i32>} : memref<8x32xf32, #tpu.memory_space<vmem>>, vector<8x32xf32>,
    } else {
    }
    %c0 = arith.constant 0 : index
    %c0_1 = arith.constant 0 : index
    %3 = vector.load %arg10[%c0, %c0_1] : memref<32x32xf32, #tpu.memory_space<vmem>>, vector<32x32xf32>
    %4 = arith.truncf %3 : vector<32x32xf32> to vector<32x32xbf16>
    %c0_2 = arith.constant 0 : index
    %c0_3 = arith.constant 0 : index
    %5 = vector.load %arg5[%c0_2, %c0_3] : memref<32x128xbf16, #tpu.memory_space<vmem>>, vector<32x128xbf16>
    %cst = arith.constant dense<0.000000e+00> : vector<32x128xf32>
    %6 = tpu.matmul %4, %5, %cst {dimension_numbers = #tpu.dot_dimension_numbers<[1], [0], [0], [1], [0, 0, 1, 1], [], []>} : vector<32x32xbf16>, vector<32x128xbf16>, vector<32x128xf32> -> vector<32x128xf32>
    %c0_4 = arith.constant 0 : index
    %c0_5 = arith.constant 0 : index
    %7 = vector.load %arg6[%c0_4, %c0_5] : memref<1x128xf32, #tpu.memory_space<vmem>>, vector<1x128xf32>
    %8 = vector.broadcast %7 : vector<1x128xf32> to vector<32x128xf32>
    %9 = arith.addf %6, %8 : vector<32x128xf32>
    %c0_6 = arith.constant 0 : index
    %c0_7 = arith.constant 0 : index
    %10 = vector.load %arg7[%c0_6, %c0_7] : memref<32x128xf32, #tpu.memory_space<vmem>>, vector<32x128xf32>
    tpu.vector_store %arg7[%c0_6, %c0_7], %9 {strides = array<i32>} : memref<32x128xf32, #tpu.memory_space<vmem>>, vector<32x128xf32>,
    return
  }
  func.func @transform_0(%arg0: i32, %arg1: i32) -> (i32, i32, i32) {
    %c0_i32 = arith.constant 0 : i32
    %c0_i32_0 = arith.constant 0 : i32
    %c0_i32_1 = arith.constant 0 : i32
    return %arg0, %c0_i32, %c0_i32_0 : i32, i32, i32
  }
  func.func @transform_1(%arg0: i32, %arg1: i32) -> (i32, i32) {
    %c0_i32 = arith.constant 0 : i32
    %c0_i32_0 = arith.constant 0 : i32
    %c0_i32_1 = arith.constant 0 : i32
    return %c0_i32, %c0_i32_0 : i32, i32
  }
  func.func @transform_2(%arg0: i32, %arg1: i32) -> (i32, i32) {
    %c0_i32 = arith.constant 0 : i32
    %c0_i32_0 = arith.constant 0 : i32
    %c0_i32_1 = arith.constant 0 : i32
    return %c0_i32, %c0_i32_0 : i32, i32
  }
  func.func @transform_3(%arg0: i32, %arg1: i32) -> (i32, i32) {
    %c0_i32 = arith.constant 0 : i32
    %c0_i32_0 = arith.constant 0 : i32
    return %c0_i32, %arg1 : i32, i32
  }
  func.func @transform_4(%arg0: i32, %arg1: i32) -> (i32, i32) {
    %c0_i32 = arith.constant 0 : i32
    %c0_i32_0 = arith.constant 0 : i32
    return %c0_i32, %arg1 : i32, i32
  }
  func.func @transform_5(%arg0: i32, %arg1: i32) -> (i32, i32) {
    %c0_i32 = arith.constant 0 : i32
    return %arg0, %arg1 : i32, i32
  }
}

</mosaic_0001>

<bundles_post_ra>
// kernel: lm_lstm_forward.1
= control target key start
LH: loop header
LB: loop body
LE: loop exit
PB: predicated region body
PF: predicated region fallthrough
CT: control target
= control target key end

     0   :  { %s1100_s18 = smov 0   ;;  %s1102_s19 = smov 0   ;;  %s1264_s0 = inlined_call_operand.vmem [shape: bf16[8,8,32], index: 0, kind: input, shape index: {}]   ;;  %s1265_s1 = inlined_call_operand.vmem [shape: bf16[64,128], index: 1, kind: input, shape index: {}]   ;;  %s1266_s2 = inlined_call_operand.vmem [shape: f32[1,128], index: 2, kind: input, shape index: {}]   ;;  %s1267_s3 = inlined_call_operand.vmem [shape: bf16[32,128], index: 3, kind: input, shape index: {}]   ;;  %s1268_s4 = inlined_call_operand.vmem [shape: f32[1,128], index: 4, kind: input, shape index: {}]   ;;  %s1269_s5 = inlined_call_operand.vmem [shape: f32[64,128], index: 5, kind: output, shape index: {}]  }
   0x1   :  { %s1104_s20 = smov 0  }
   0x2 LB: > { %s27_s21 = sadd.s32 1, %s1058_s19  ;;  %p863_p0 = scmp.ge.s32.totalorder %s1062_s20, 1  ;;  %s1062_s20 = sphi %s1104_s20, %s15_s20   ;;  %s1058_s19 = sphi %s1102_s19, %s1271_s19   ;;  %s1054_s18 = sphi %s1100_s18, %s1270_s18  }
   0x3   : > { %p29_p1 = scmp.ge.s32.totalorder %s27_s21, 2  ;;  %p219_p2 = scmp.lt.s32.totalorder %s1062_s20, 3 }
   0x5   : > { %s1273_s21 = smov (%p29_p1, %s27_s21), 0  ;;  %p220_p3 = pnand %p863_p0, %p219_p2 }
   0x6   : > { %s864_s22 = sshll.u32 (!%p220_p3), %s1054_s18, 2  ;;  %p868_p5 = scmp.ne.s32.totalorder (!%p220_p3), %s1054_s18, 0 }
   0x7   : > { %223 = sbr.rel (%p220_p3) target bundleno = 3121 (0xc31), region = 40  ;;  %p258_p4 = scmp.lt.s32.totalorder (!%p220_p3), %s864_s22, 7 }
   0xc   : > { %s1275_s22 = smov (!%p258_p4, %s864_s22), 7  ;;  %287 = sbr.rel (%p868_p5) target bundleno = 19 (0x13), region = 48 }
   0xd   : > { %s865_s23 = sshll.u32 %s1275_s22, 2  ;;  %s867_s24 = sshll.u32 %s1275_s22, 3 }
   0xe   : > { %s1121_s27 = scalar_lea.vmem %s1264_s0, %s865_s23  ;;  %s1126_s30 = scalar_lea.vmem %s1269_s5, %s867_s24 }
  0x11   : > { %vm288_vm0 = vcmask 261120   ;;  %v1064_v0 = vmov 0.0  }
  0x12   : > { %289 = vst.msk [vmem:[#allocation2] sm:$0xff] %vm288_vm0, %v1064_v0  ;;  %290 = vst.msk [vmem:[#allocation3] sm:$0xff] %vm288_vm0, %v1064_v0 }
  0x13 PF: > { %v1131_v2 = vld [vmem:[%s1265_s1 + $0x18] sm:$0xff]   ;;  %v1065_v4 = vmov 0.0   ;;  %v1139_v5 = vld [vmem:[%s1265_s1 + $0x10] sm:$0xff]   ;;  %s1066_s10 = smov 32   ;;  %vm1067_vm1 = vmmov 0   ;;  %v1154_v7 = vld [vmem:[%s1265_s1 + $0x8] sm:$0xff]  }
  0x14   : > { %916 = vmatprep.subr.bf16.mxu0 %v1065_v4  ;;  %928 = vmatprep.subr.bf16.mxu1 %v1065_v4  ;;  %v1005_v8 = vld [vmem:[%s1265_s1] sm:$0xff]   ;;  %vm307_vm2 = vcmask 261120   ;;  %vm341_vm3 = vcmask 523264   ;;  %s1068_s17 = smov 64   ;;  %v879_v55 = vld [vmem:[%s1121_s27 + $0x8] sm:$0xf] }
  0x15   : > { %917 = vmatpush3.bf16.msra.mxu0 %v1131_v2  ;;  %929 = vmatpush3.bf16.msra.mxu1 %v1131_v2  ;;  %v302_v9 = vld [vmem:[%s1121_s27] sm:$0xf]  ;;  %v876_v33 = vld [vmem:[%s1121_s27 + $0x4] sm:$0xf]  ;;  %s1069_s18 = smov 96  }
  0x16   : > { %918 = vmatprep.subr.bf16.mxu0 %v1065_v4  ;;  %924 = vmatprep.mubr.msk.bf16.mxu0 %vm1067_vm1, %v1065_v4  ;;  %v1182_v12 = vld [vmem:[%s1266_s2] ss:$0 sm:$0xff] }
  0x17   : > { %930 = vmatprep.subr.bf16.mxu1 %v1065_v4  ;;  %936 = vmatprep.mubr.msk.bf16.mxu1 %vm1067_vm1, %v1065_v4 }
  0x19   : > { %v300_v1 = vld [vmem:[#allocation2] sm:$0xff]  ;;  %v301_v6 = vld [vmem:[#allocation3] sm:$0xff]  ;;  %919 = vmatpush3.bf16.msra.mxu0 %v1139_v5  ;;  %931 = vmatpush3.bf16.msra.mxu1 %v1139_v5 }
  0x1a   : > { %v303_v3 = vpack.c.bf16 %v300_v1, %v300_v1  ;;  %392 = vrot.lane.b32.xlu1 %v301_v6, %s1066_s10  ;;  %920 = vmatprep.subr.bf16.mxu0 %v1065_v4 }
  0x1b   : > { %932 = vmatprep.subr.bf16.mxu1 %v1065_v4 }
  0x1c   : > { %305 = vrot.lane.b32.xlu0 %v303_v3, %s1066_s10 }
  0x1d   : > { %921 = vmatpush3.bf16.msra.mxu0 %v1154_v7  ;;  %933 = vmatpush3.bf16.msra.mxu1 %v1154_v7 }
  0x1e   : > { %922 = vmatprep.subr.bf16.mxu0 %v1065_v4  ;;  %934 = vmatprep.subr.bf16.mxu1 %v1065_v4 }
  0x21   : > { %923 = vmatpush3.bf16.msra.mxu0 %v1005_v8  ;;  %935 = vmatpush3.bf16.msra.mxu1 %v1005_v8 }
  0x22   : > { %940 = vmatprep.subr.bf16.mxu0 %v1065_v4  ;;  %952 = vmatprep.subr.bf16.mxu1 %v1065_v4 }
  0x8c   : > { %v393_v25 = vpop.permute.xlu1 %392 }
  0x8e   : > { %v306_v10 = vpop.permute.xlu0 %305 }
  0x8f   : > { %v310_v11 = vsel %vm307_vm2, %v302_v9, %v306_v10 }
  0x90   : > { %925 = vmatmul.mubr.msk.bf16.vlgmr.msra.gmra.mxu0 %vm341_vm3, %v310_v11 }
  0x91   : > { %941 = vmatpush3.bf16.msra.mxu0 %v1131_v2  ;;  %948 = vmatprep.mubr.msk.bf16.mxu0 %vm1067_vm1, %v1065_v4 }
  0x92   : > { %942 = vmatprep.subr.bf16.mxu0 %v1065_v4 }
  0x95   : > { %943 = vmatpush3.bf16.msra.mxu0 %v1139_v5 }
  0x96   : > { %944 = vmatprep.subr.bf16.mxu0 %v1065_v4 }
  0x99   : > { %945 = vmatpush3.bf16.msra.mxu0 %v1154_v7 }
  0x9a   : > { %946 = vmatprep.subr.bf16.mxu0 %v1065_v4 }
  0x9d   : > { %947 = vmatpush3.bf16.msra.mxu0 %v1005_v8 }
 0x150   : > { %v378_v13 = vpop.f32.mrf.mxu0 }
 0x151   : > { %v379_v14 = vadd.f32 %v1182_v12, %v378_v13 }
 0x152   : > { %v926_v15 = vpop.f32.mrf.mxu0 }
 0x153   : > { %1008 = vtanh.f32 %v379_v14  ;;  %v875_v19 = vmul.f32 -1.442695, %v379_v14  ;;  %v882_v14 = vld [vmem:[%s1121_s27 + $0xc] sm:$0xf] }
 0x154   : > { %v381_v16 = vpop.f32.mrf.mxu0 }
 0x155   : > { %1010 = vpow2.f32 %v875_v19 }
 0x156   : > { %v927_v17 = vpop.f32.mrf.mxu0 }
 0x160   : > { %v1009_v18 = vpop.eup %1008 }
 0x161   : > { %397 = vrot.lane.b32.xlu0 %v1009_v18, %s1068_s17 }
 0x162   : > { %v1011_v20 = vpop.eup %1010 }
 0x163   : > { %v387_v21 = vadd.f32 1.0, %v1011_v20 }
 0x165   : > { %1012 = vrcp.f32 %v387_v21 }
 0x172   : > { %v1013_v22 = vpop.eup %1012 }
 0x173   : > { %v395_v26 = vmul.f32 %v1013_v22, %v393_v25 }
 0x1d3   : > { %v398_v23 = vpop.permute.xlu0 %397 }
 0x1d4   : > { %v400_v24 = vmul.f32 %v1013_v22, %v398_v23 }
 0x1d6   : > { %402 = vrot.lane.b32.xlu1 %v400_v24, %s1066_s10 }
 0x248   : > { %v403_v27 = vpop.permute.xlu1 %402 }
 0x249   : > { %v405_v28 = vadd.f32 %v403_v27, %v395_v26 }
 0x24b   : > { %1014 = vtanh.f32 %v405_v28 }
 0x258   : > { %v1015_v29 = vpop.eup %1014 }
 0x259   : > { %408 = vrot.lane.b32.xlu0 %v1015_v29, %s1068_s17 }
 0x2cb   : > { %v409_v30 = vpop.permute.xlu0 %408 }
 0x2cc   : > { %v1188_v31 = vmul.f32 %v1013_v22, %v409_v30 }
 0x2ce   : > { %v419_v32 = vpack.c.bf16 %v1188_v31, %v1188_v31 }
 0x2d0   : > { %421 = vrot.lane.b32.xlu1 %v419_v32, %s1068_s17 }
 0x342   : > { %v422_v34 = vpop.permute.xlu1 %421 }
 0x343   : > { %v425_v35 = vsel %vm307_vm2, %v876_v33, %v422_v34 }
 0x344   : > { %937 = vmatmul.mubr.msk.bf16.vlgmr.msra.gmra.mxu1 %vm341_vm3, %v425_v35  ;;  %v1006_v35 = vld [vmem:[%s1267_s3 + $0x8] sm:$0xff]  }
 0x345   : > { %953 = vmatpush3.bf16.msra.mxu1 %v1131_v2  ;;  %960 = vmatprep.mubr.msk.bf16.mxu1 %vm1067_vm1, %v1065_v4 }
 0x346   : > { %954 = vmatprep.subr.bf16.mxu1 %v1065_v4  ;;  %964 = vmatprep.subr.bf16.mxu0 %v1006_v35 }
 0x349   : > { %955 = vmatpush3.bf16.msra.mxu1 %v1139_v5 }
 0x34a   : > { %956 = vmatprep.subr.bf16.mxu1 %v1065_v4 }
 0x34d   : > { %957 = vmatpush3.bf16.msra.mxu1 %v1154_v7 }
 0x34e   : > { %958 = vmatprep.subr.bf16.mxu1 %v1065_v4 }
 0x351   : > { %959 = vmatpush3.bf16.msra.mxu1 %v1005_v8 }
 0x404   : > { %v462_v36 = vpop.f32.mrf.mxu1 }
 0x405   : > { %v463_v37 = vadd.f32 %v1182_v12, %v462_v36  ;;  %v1007_v36 = vld [vmem:[%s1267_s3] sm:$0xff]  }
 0x406   : > { %v938_v38 = vpop.f32.mrf.mxu1 }
 0x407   : > { %1016 = vtanh.f32 %v463_v37  ;;  %v878_v42 = vmul.f32 -1.442695, %v463_v37 }
 0x408   : > { %v465_v39 = vpop.f32.mrf.mxu1 }
 0x409   : > { %1018 = vpow2.f32 %v878_v42 }
 0x40a   : > { %v939_v40 = vpop.f32.mrf.mxu1 }
 0x414   : > { %v1017_v41 = vpop.eup %1016 }
 0x415   : > { %477 = vrot.lane.b32.xlu0 %v1017_v41, %s1068_s17 }
 0x416   : > { %v1019_v43 = vpop.eup %1018 }
 0x417   : > { %v471_v44 = vadd.f32 1.0, %v1019_v43 }
 0x419   : > { %1020 = vrcp.f32 %v471_v44 }
 0x426   : > { %v1021_v45 = vpop.eup %1020 }
 0x427   : > { %v475_v48 = vmul.f32 %v1021_v45, %v405_v28 }
 0x487   : > { %v478_v46 = vpop.permute.xlu0 %477 }
 0x488   : > { %v480_v47 = vmul.f32 %v1021_v45, %v478_v46 }
 0x48a   : > { %482 = vrot.lane.b32.xlu1 %v480_v47, %s1066_s10 }
 0x4fc   : > { %v483_v49 = vpop.permute.xlu1 %482 }
 0x4fd   : > { %v485_v50 = vadd.f32 %v483_v49, %v475_v48  ;;  %v885_v48 = vld [vmem:[%s1268_s4] ss:$0 sm:$0xff] }
 0x4ff   : > { %1022 = vtanh.f32 %v485_v50 }
 0x50c   : > { %v1023_v51 = vpop.eup %1022 }
 0x50d   : > { %488 = vrot.lane.b32.xlu0 %v1023_v51, %s1068_s17 }
 0x57f   : > { %v489_v52 = vpop.permute.xlu0 %488 }
 0x580   : > { %v1208_v53 = vmul.f32 %v1021_v45, %v489_v52 }
 0x582   : > { %v500_v54 = vpack.c.bf16 %v1208_v53, %v1208_v53 }
 0x584   : > { %502 = vrot.lane.b32.xlu1 %v500_v54, %s1068_s17 }
 0x5f6   : > { %v503_v56 = vpop.permute.xlu1 %502 }
 0x5f7   : > { %v506_v57 = vsel %vm307_vm2, %v879_v55, %v503_v56 }
 0x5f8   : > { %949 = vmatmul.mubr.msk.bf16.vlgmr.msra.gmra.mxu0 %vm341_vm3, %v506_v57 }
 0x5f9   : > { %965 = vmatpush3.bf16.msra.mxu0 %v1006_v35 }
 0x5fa   : > { %966 = vmatprep.subr.bf16.mxu0 %v1007_v36 }
 0x5fd   : > { %967 = vmatpush3.bf16.msra.mxu0 %v1007_v36 }
 0x6b8   : > { %v543_v58 = vpop.f32.mrf.mxu0 }
 0x6b9   : > { %v544_v59 = vadd.f32 %v1182_v12, %v543_v58 }
 0x6ba   : > { %v950_v60 = vpop.f32.mrf.mxu0 }
 0x6bb   : > { %1024 = vtanh.f32 %v544_v59  ;;  %v881_v0 = vmul.f32 -1.442695, %v544_v59 }
 0x6bc   : > { %v546_v61 = vpop.f32.mrf.mxu0 }
 0x6bd   : > { %1026 = vpow2.f32 %v881_v0 }
 0x6be   : > { %v951_v62 = vpop.f32.mrf.mxu0 }
 0x6c8   : > { %v1025_v63 = vpop.eup %1024 }
 0x6c9   : > { %558 = vrot.lane.b32.xlu0 %v1025_v63, %s1068_s17 }
 0x6ca   : > { %v1027_v1 = vpop.eup %1026 }
 0x6cb   : > { %v552_v2 = vadd.f32 1.0, %v1027_v1 }
 0x6cd   : > { %1028 = vrcp.f32 %v552_v2 }
 0x6da   : > { %v1029_v3 = vpop.eup %1028 }
 0x6db   : > { %v556_v6 = vmul.f32 %v1029_v3, %v485_v50 }
 0x73b   : > { %v559_v4 = vpop.permute.xlu0 %558 }
 0x73c   : > { %v561_v5 = vmul.f32 %v1029_v3, %v559_v4 }
 0x73e   : > { %563 = vrot.lane.b32.xlu1 %v561_v5, %s1066_s10 }
 0x7b0   : > { %v564_v7 = vpop.permute.xlu1 %563 }
 0x7b1   : > { %v566_v8 = vadd.f32 %v564_v7, %v556_v6 }
 0x7b3   : > { %1030 = vtanh.f32 %v566_v8 }
 0x7c0   : > { %v1031_v9 = vpop.eup %1030 }
 0x7c1   : > { %569 = vrot.lane.b32.xlu0 %v1031_v9, %s1068_s17 }
 0x833   : > { %v570_v10 = vpop.permute.xlu0 %569 }
 0x834   : > { %v572_v11 = vmul.f32 %v1029_v3, %v570_v10 }
 0x836   : > { %v581_v13 = vpack.c.bf16 %v572_v11, %v572_v11 }
 0x838   : > { %583 = vrot.lane.b32.xlu1 %v581_v13, %s1068_s17 }
 0x8aa   : > { %v584_v15 = vpop.permute.xlu1 %583 }
 0x8ab   : > { %v587_v16 = vsel %vm307_vm2, %v882_v14, %v584_v15 }
 0x8ac   : > { %961 = vmatmul.mubr.msk.bf16.vlgmr.msra.gmra.mxu1 %vm341_vm3, %v587_v16 }
 0x96c   : > { %v624_v17 = vpop.f32.mrf.mxu1 }
 0x96d   : > { %v625_v18 = vadd.f32 %v1182_v12, %v624_v17 }
 0x96e   : > { %v962_v19 = vpop.f32.mrf.mxu1 }
 0x96f   : > { %1032 = vtanh.f32 %v625_v18  ;;  %v884_v23 = vmul.f32 -1.442695, %v625_v18 }
 0x970   : > { %v627_v20 = vpop.f32.mrf.mxu1 }
 0x971   : > { %1034 = vpow2.f32 %v884_v23 }
 0x972   : > { %v963_v21 = vpop.f32.mrf.mxu1 }
 0x97c   : > { %v1033_v22 = vpop.eup %1032 }
 0x97d   : > { %639 = vrot.lane.b32.xlu0 %v1033_v22, %s1068_s17 }
 0x97e   : > { %v1035_v24 = vpop.eup %1034 }
 0x97f   : > { %v633_v25 = vadd.f32 1.0, %v1035_v24 }
 0x981   : > { %1036 = vrcp.f32 %v633_v25 }
 0x98e   : > { %v1037_v26 = vpop.eup %1036 }
 0x98f   : > { %v637_v12 = vmul.f32 %v1037_v26, %v566_v8 }
 0x9ef   : > { %v640_v27 = vpop.permute.xlu0 %639 }
 0x9f0   : > { %v642_v28 = vmul.f32 %v1037_v26, %v640_v27 }
 0x9f2   : > { %644 = vrot.lane.b32.xlu1 %v642_v28, %s1066_s10 }
 0x9f6   : > { %413 = vrot.lane.b32.xlu1 %v1188_v31, %s1066_s10 }
 0x9fa   : > { %574 = vrot.lane.b32.xlu1 %v572_v11, %s1066_s10 }
 0xa64   : > { %v645_v29 = vpop.permute.xlu1 %644 }
 0xa65   : > { %v647_v30 = vadd.f32 %v645_v29, %v637_v12 }
 0xa67   : > { %1038 = vtanh.f32 %v647_v30  ;;  %662 = vrot.lane.b32.xlu1 %v647_v30, %s1069_s18 }
 0xa68   : > { %v414_v32 = vpop.permute.xlu1 %413 }
 0xa69   : > { %416 = vst.msk [vmem:[#allocation4] sm:$0xff] %vm307_vm2, %v414_v32 }
 0xa6c   : > { %v575_v33 = vpop.permute.xlu1 %574 }
 0xa6d   : > { %578 = vst.msk [vmem:[#allocation4 + $0x10] sm:$0xff] %vm307_vm2, %v575_v33 }
 0xa70   : > { %v666_v40 = vld [vmem:[#allocation4] sm:$0xff] }
 0xa74   : > { %v1039_v34 = vpop.eup %1038  ;;  %v668_v44 = vld [vmem:[#allocation4 + $0x10] sm:$0xff] }
 0xa75   : > { %650 = vrot.lane.b32.xlu0 %v1039_v34, %s1068_s17 }
 0xa79   : > { %493 = vrot.lane.b32.xlu0 %v1208_v53, %s1066_s10 }
 0xad9   : > { %v663_v31 = vpop.permute.xlu1 %662 }
 0xada   : > { %665 = vst.msk [vmem:[#allocation3] sm:$0xff] %vm307_vm2, %v663_v31 }
 0xae7   : > { %v651_v37 = vpop.permute.xlu0 %650 }
 0xae8   : > { %v653_v38 = vmul.f32 %v1037_v26, %v651_v37 }
 0xaea   : > { %655 = vrot.lane.b32.xlu0 %v653_v38, %s1066_s10 }
 0xaeb   : > { %v494_v39 = vpop.permute.xlu0 %493 }
 0xaec   : > { %497 = vst.msk [vmem:[#allocation4 + $0x8] sm:$0xff] %vm307_vm2, %v494_v39 }
 0xaf3   : > { %v667_v41 = vld [vmem:[#allocation4 + $0x8] sm:$0xff] }
 0xaf4   : > { %v670_v42 = vpack.c.bf16 %v667_v41, %v666_v40 }
 0xaf6   : > { %968 = vmatprep.mubr.msk.bf16.mxu0 %vm307_vm2, %v670_v42 }
 0xb5c   : > { %v656_v43 = vpop.permute.xlu0 %655 }
 0xb5d   : > { %659 = vst.msk [vmem:[#allocation4 + $0x18] sm:$0xff] %vm307_vm2, %v656_v43  ;;  %660 = vst.msk [vmem:[#allocation2] sm:$0xff] %vm307_vm2, %v656_v43 }
 0xb64   : > { %v669_v45 = vld [vmem:[#allocation4 + $0x18] sm:$0xff] }
 0xb65   : > { %v671_v46 = vpack.c.bf16 %v669_v45, %v668_v44 }
 0xb67   : > { %969 = vmatmul.mubr.msk.bf16.vlgmr.msra.gmra.mxu0 %vm307_vm2, %v671_v46 }
 0xc27   : > { %v970_v47 = vpop.f32.mrf.mxu0 }
 0xc28   : > { %v745_v54 = vadd.f32 %v970_v47, %v885_v48 }
 0xc29   : > { %v736_v49 = vpop.f32.mrf.mxu0 }
 0xc2a   : > { %v737_v50 = vadd.f32 %v885_v48, %v736_v49  ;;  %753 = vst [vmem:[%s1126_s30 + $0x10] sm:$0xff] %v745_v54 }
 0xc2b   : > { %v971_v51 = vpop.f32.mrf.mxu0 }
 0xc2c   : > { %751 = vst [vmem:[%s1126_s30] sm:$0xff] %v737_v50  ;;  %v748_v55 = vadd.f32 %v971_v51, %v885_v48 }
 0xc2d   : > { %v739_v52 = vpop.f32.mrf.mxu0 }
 0xc2e   : > { %v740_v53 = vadd.f32 %v885_v48, %v739_v52  ;;  %754 = vst [vmem:[%s1126_s30 + $0x18] sm:$0xff] %v748_v55 }
 0xc30   : > { %752 = vst [vmem:[%s1126_s30 + $0x8] sm:$0xff] %v740_v53 }
 0xc31 PF: > { %s15_s20 = sadd.s32 1, %s1062_s20   ;;  %s1270_s18 = smov %s1058_s19 }
 0xc32   : > { %p12_p6 = scmp.ge.s32.totalorder %s15_s20, 4   ;;  %s1271_s19 = smov %s1273_s21 }
 0xc34   :  { %14 = sbr.rel (!%p12_p6) target bundleno = 2 (0x2), region = 90 }

</bundles_post_ra>
